<compile_context>
chip_gen: v6e
topology: v6e:2x2x1
jax: 0.10.0
libtpu: 0.0.40
codegen_flags: <defaults>
</compile_context>

<pallas_src>
import jax
import jax.numpy as jnp
from jax.experimental import pallas as pl
from jax.experimental.pallas import tpu as pltpu

# Deterministic "parameters" of the two component functions.
A0 = 0.08
A1 = -0.05
PI = 3.141592653589793

LANE = 128


def _diffeo_kernel(u_ref, v_ref, o0_ref, o1_ref):
    # All refs have tile shape (tr, 128): fully lane/sublane dense.
    u = u_ref[...]
    v = v_ref[...]
    s = jnp.sin(PI * u) * jnp.sin(PI * v)
    o0_ref[...] = (u + A0 * s).astype(o0_ref.dtype)   # component S0(X) -> out[..., 0]
    o1_ref[...] = (v + A1 * s).astype(o1_ref.dtype)   # component S1(X) -> out[..., 1]


def diffeomorphism(X, block_rows=2048):
    """Pallas equivalent of Diffeomorphism((S0, S1)).forward(X) for X of shape (N, 2)."""
    N, d = X.shape
    assert d == 2, "Diffeomorphism expects last dim == 2"

    rows = pl.cdiv(N, LANE)                         # lane-dense rows needed
    tr = min(block_rows, pl.cdiv(rows, 8) * 8)      # rows per block, multiple of 8
    rows_pad = pl.cdiv(rows, tr) * tr               # pad rows to a multiple of tr
    n_pad = rows_pad * LANE

    # Deinterleave coordinates and lay them out lane-dense (rows_pad, 128).
    u = jnp.pad(X[:, 0], (0, n_pad - N)).reshape(rows_pad, LANE)
    v = jnp.pad(X[:, 1], (0, n_pad - N)).reshape(rows_pad, LANE)

    spec = pl.BlockSpec((tr, LANE), lambda i: (i, 0))
    out0, out1 = pl.pallas_call(
        _diffeo_kernel,
        out_shape=(
            jax.ShapeDtypeStruct((rows_pad, LANE), X.dtype),
            jax.ShapeDtypeStruct((rows_pad, LANE), X.dtype),
        ),
        grid_spec=pl.GridSpec(
            grid=(rows_pad // tr,),
            in_specs=[spec, spec],
            out_specs=(spec, spec),
        ),
        compiler_params=pltpu.CompilerParams(dimension_semantics=("parallel",)),
    )(u, v)

    # Re-interleave to (N, 2) and drop the padding (cheap XLA ops in the wrapper).
    return jnp.stack([out0.reshape(-1)[:N], out1.reshape(-1)[:N]], axis=-1)


def diffeomorphism_ref(X):
    """Pure-JAX reference matching the PyTorch semantics."""
    u = X[..., 0]
    v = X[..., 1]
    s = jnp.sin(PI * u) * jnp.sin(PI * v)
    out = jnp.zeros_like(X)
    out = out.at[..., 0].set(u + A0 * s)
    out = out.at[..., 1].set(v + A1 * s)
    return out


if __name__ == "__main__":
    key = jax.random.PRNGKey(0)
    # Small deterministic point clouds on the unit square; the second size is
    # deliberately NOT a multiple of 128 to exercise the padded-tail path.
    for N in (256, 1000):
        X = jax.random.uniform(key, (N, 2), dtype=jnp.float32)

        out = jax.block_until_ready(diffeomorphism(X))
        ref = diffeomorphism_ref(X)

        assert out.shape == X.shape and out.dtype == X.dtype
        assert jnp.allclose(out, ref, atol=1e-6, rtol=1e-6), f"mismatch vs reference at N={N}"

    print("KERNEL_OK")
</pallas_src>

<mosaic_0001>
module attributes {stable_mosaic.version = 11 : i64} {
  func.func @_diffeo_kernel(%arg0: i32, %arg1: memref<8x128xf32, #tpu.memory_space<vmem>>, %arg2: memref<8x128xf32, #tpu.memory_space<vmem>>, %arg3: memref<8x128xf32, #tpu.memory_space<vmem>>, %arg4: memref<8x128xf32, #tpu.memory_space<vmem>>) attributes {dimension_semantics = [#tpu.dimension_semantics<parallel>], iteration_bounds = array<i64: 1>, scalar_prefetch = 0 : i64, scratch_operands = 0 : i64, tpu.core_type = #tpu.core_type<tc>, window_params = [{transform_indices = @transform_0, window_bounds = array<i64: 8, 128>}, {transform_indices = @transform_1, window_bounds = array<i64: 8, 128>}, {transform_indices = @transform_2, window_bounds = array<i64: 8, 128>}, {transform_indices = @transform_3, window_bounds = array<i64: 8, 128>}]} {
    %c0 = arith.constant 0 : index
    %c0_0 = arith.constant 0 : index
    %0 = vector.load %arg1[%c0, %c0_0] : memref<8x128xf32, #tpu.memory_space<vmem>>, vector<8x128xf32>
    %c0_1 = arith.constant 0 : index
    %c0_2 = arith.constant 0 : index
    %1 = vector.load %arg2[%c0_1, %c0_2] : memref<8x128xf32, #tpu.memory_space<vmem>>, vector<8x128xf32>
    %cst = arith.constant 3.14159274 : f32
    %2 = vector.broadcast %cst : f32 to vector<8x128xf32>
    %3 = arith.mulf %2, %0 : vector<8x128xf32>
    %4 = math.sin %3 : vector<8x128xf32>
    %cst_3 = arith.constant 3.14159274 : f32
    %5 = vector.broadcast %cst_3 : f32 to vector<8x128xf32>
    %6 = arith.mulf %5, %1 : vector<8x128xf32>
    %7 = math.sin %6 : vector<8x128xf32>
    %8 = arith.mulf %4, %7 : vector<8x128xf32>
    %cst_4 = arith.constant 8.000000e-02 : f32
    %9 = vector.broadcast %cst_4 : f32 to vector<8x128xf32>
    %10 = arith.mulf %9, %8 : vector<8x128xf32>
    %11 = arith.addf %0, %10 : vector<8x128xf32>
    %c0_5 = arith.constant 0 : index
    %c0_6 = arith.constant 0 : index
    %12 = vector.load %arg3[%c0_5, %c0_6] : memref<8x128xf32, #tpu.memory_space<vmem>>, vector<8x128xf32>
    tpu.vector_store %arg3[%c0_5, %c0_6], %11 {strides = array<i32>} : memref<8x128xf32, #tpu.memory_space<vmem>>, vector<8x128xf32>,
    %cst_7 = arith.constant -5.000000e-02 : f32
    %13 = vector.broadcast %cst_7 : f32 to vector<8x128xf32>
    %14 = arith.mulf %13, %8 : vector<8x128xf32>
    %15 = arith.addf %1, %14 : vector<8x128xf32>
    %c0_8 = arith.constant 0 : index
    %c0_9 = arith.constant 0 : index
    %16 = vector.load %arg4[%c0_8, %c0_9] : memref<8x128xf32, #tpu.memory_space<vmem>>, vector<8x128xf32>
    tpu.vector_store %arg4[%c0_8, %c0_9], %15 {strides = array<i32>} : memref<8x128xf32, #tpu.memory_space<vmem>>, vector<8x128xf32>,
    return
  }
  func.func @transform_0(%arg0: i32) -> (i32, i32) {
    %c0_i32 = arith.constant 0 : i32
    %c0_i32_0 = arith.constant 0 : i32
    return %arg0, %c0_i32 : i32, i32
  }
  func.func @transform_1(%arg0: i32) -> (i32, i32) {
    %c0_i32 = arith.constant 0 : i32
    %c0_i32_0 = arith.constant 0 : i32
    return %arg0, %c0_i32 : i32, i32
  }
  func.func @transform_2(%arg0: i32) -> (i32, i32) {
    %c0_i32 = arith.constant 0 : i32
    %c0_i32_0 = arith.constant 0 : i32
    return %arg0, %c0_i32 : i32, i32
  }
  func.func @transform_3(%arg0: i32) -> (i32, i32) {
    %c0_i32 = arith.constant 0 : i32
    %c0_i32_0 = arith.constant 0 : i32
    return %arg0, %c0_i32 : i32, i32
  }
}

</mosaic_0001>

<bundles_post_ra>
// kernel: tpu_custom_call.1
= control target key start
LH: loop header
LB: loop body
LE: loop exit
PB: predicated region body
PF: predicated region fallthrough
CT: control target
= control target key end

     0   :  { %9 = vsyncpa [#allocation3], 0  ;;  %s538_s0 = inlined_call_operand.hbm [shape: f32[8,128], index: 0, kind: input, shape index: {}]   ;;  %s539_s1 = inlined_call_operand.hbm [shape: f32[8,128], index: 1, kind: input, shape index: {}]   ;;  %s540_s2 = inlined_call_operand.hbm [shape: f32[8,128], index: 2, kind: output, shape index: {0}]   ;;  %s541_s3 = inlined_call_operand.hbm [shape: f32[8,128], index: 3, kind: output, shape index: {1}]  }
   0x1   :  { %10 = vsyncpa [#allocation6], 0 }
   0x2   :  { %11 = vsyncpa [#allocation4], 0 }
   0x3   :  { %12 = vsyncpa [#allocation9], 0  ;;  %s410_s12 = smov [#allocation2]   ;;  %s411_s14 = smov [#allocation5]  }
   0x4   :  { %s19_s13 = sshll.u32 %s410_s12, 4  ;;  %s29_s15 = sshll.u32 %s411_s14, 4  ;;  %s20_s13 = int_to_ptr.vmem [resolvable:$true] %s19_s13  ;;  %s30_s15 = int_to_ptr.vmem [resolvable:$true] %s29_s15 }
   0x5   :  { %s330_s16 = scalar_lea.vmem %s20_s13, 128  ;;  %p335_p1 = scmp.lt.s32.totalorder %s20_s13, %s20_s13 }
   0x6   :  { %p331_p0 = scmp.ne.s32.totalorder %s20_s13, %s330_s16  ;;  %p336_p2 = scmp.lt.s32.totalorder %s330_s16, %s330_s16 }
   0x8   :  { %p337_p3 = por %p336_p2, %p335_p1 }
   0xa   :  { %p338_p4 = pnand %p337_p3, %p331_p0 }
   0xc   :  { %341 = shalt.err (!%p338_p4)
}
   0xd   :  { %22 = dma.hbm_to_vmem [thread:$0]  %s538_s0, 128, %s20_s13, [#allocation3]  }
   0xe   :  { %s350_s19 = scalar_lea.vmem %s30_s15, 128  ;;  %p355_p6 = scmp.lt.s32.totalorder %s30_s15, %s30_s15 }
   0xf   :  { %p351_p5 = scmp.ne.s32.totalorder %s30_s15, %s350_s19  ;;  %p356_p7 = scmp.lt.s32.totalorder %s350_s19, %s350_s19 }
  0x11   :  { %p357_p8 = por %p356_p7, %p355_p6 }
  0x13   :  { %p358_p9 = pnand %p357_p8, %p351_p5 }
  0x15   :  { %361 = shalt.err (!%p358_p9)
}
  0x16   :  { %32 = dma.hbm_to_vmem [thread:$0]  %s539_s1, 128, %s30_s15, [#allocation6]  }
  0x17   :  { %402 = dma.done.wait [#allocation3], 128  }
  0x18   :  { %403 = vsyncadd [#allocation3], 4294967168 }
  0x19   :  { %404 = dma.done.wait [#allocation6], 128  }
  0x1a   :  { %405 = vsyncadd [#allocation6], 4294967168  ;;  %v446_v0 = vld [vmem:[#allocation2] sm:$0xff]  ;;  %v448_v1 = vld [vmem:[#allocation5] sm:$0xff]  ;;  %v412_v26 = vmov 683565275  }
  0x1b   :  { %v451_v2 = vmul.f32 3.1415927, %v446_v0  ;;  %v454_v3 = vmul.f32 3.1415927, %v448_v1  ;;  %v413_v28 = vmov 2475754826  }
  0x1c   :  { %v414_v30 = vmov 2131351028   ;;  %v415_v32 = vmov 2102212464   ;;  %v416_v34 = vmov 920167782  }
  0x1d   :  { %v42_v4 = vand.u32 2147483647, %v451_v2  ;;  %v45_v5 = vand.u32 2139095040, %v451_v2  ;;  %v147_v6 = vand.u32 2147483647, %v454_v3  ;;  %v150_v7 = vand.u32 2139095040, %v454_v3 }
  0x1e   :  { %v417_v42 = vmov 1326507024   ;;  %vm44_vm14 = vcmp.lt.s32.totalorder %v451_v2, 0  ;;  %s418_s0 = smov [#allocation7]   ;;  %s419_s22 = smov [#allocation8]  }
  0x1f   :  { %v46_v8 = vshrl.u32 %v45_v5, 23  ;;  %v49_v9 = vand.u32 8388607, %v42_v4  ;;  %v151_v10 = vshrl.u32 %v150_v7, 23  ;;  %v154_v11 = vand.u32 8388607, %v147_v6 }
  0x20   :  { %vm515_vm15 = vcmp.le.f32.partialorder %v42_v4, 0.7853982  ;;  %s264_s1 = sshll.u32 %s418_s0, 4  ;;  %s274_s23 = sshll.u32 %s419_s22, 4  ;;  %s265_s1 = int_to_ptr.vmem [resolvable:$true] %s264_s1  ;;  %s275_s23 = int_to_ptr.vmem [resolvable:$true] %s274_s23 }
  0x21   :  { %v288_v12 = vadd.s32 4294967169, %v46_v8  ;;  %v292_v13 = vadd.s32 4294967169, %v151_v10  ;;  %v50_v15 = vor.u32 8388608, %v49_v9  ;;  %v155_v16 = vor.u32 8388608, %v154_v11  ;;  %s362_s24 = scalar_lea.vmem %s265_s1, 128  ;;  %p367_p11 = scmp.lt.s32.totalorder %s265_s1, %s265_s1 }
  0x22   :  { %p363_p10 = scmp.ne.s32.totalorder %s265_s1, %s362_s24  ;;  %p368_p12 = scmp.lt.s32.totalorder %s362_s24, %s362_s24 }
  0x23   :  { %v52_v14 = vadd.s32 1, %v288_v12  ;;  %v157_v17 = vadd.s32 1, %v292_v13  ;;  %v464_v22 = vshll.u32 %v50_v15, 8  ;;  %v466_v24 = vshll.u32 %v155_v16, 8 }
  0x24   :  { %p369_p13 = por %p368_p12, %p367_p11 }
  0x25   :  { %vm53_vm0 = vcmp.gt.s32.totalorder %v52_v14, 0  ;;  %vm158_vm1 = vcmp.gt.s32.totalorder %v157_v17, 0 }
  0x26   :  { %v54_v18 = vsel %vm53_vm0, %v52_v14, 0  ;;  %v159_v21 = vsel %vm158_vm1, %v157_v17, 0  ;;  %vm149_vm0 = vcmp.lt.s32.totalorder %v454_v3, 0  ;;  %vm148_vm1 = vcmp.le.f32.partialorder %v147_v6, 0.7853982  ;;  %p370_p0 = pnand %p369_p13, %p363_p10 }
  0x27   :  { %v55_v19 = vshrl.u32 %v54_v18, 5  ;;  %v56_v20 = vand.u32 31, %v54_v18  ;;  %v161_v23 = vand.u32 31, %v159_v21  ;;  %v468_v36 = vshrl.u32 %v159_v21, 5 }
  0x29   :  { %v57_v25 = vsub.s32 32, %v56_v20  ;;  %v59_v27 = vshll.u32 %v412_v26, %v56_v20  ;;  %v62_v29 = vshll.u32 %v413_v28, %v56_v20  ;;  %v65_v31 = vshll.u32 %v414_v30, %v56_v20 }
  0x2a   :  { %v68_v33 = vshll.u32 %v415_v32, %v56_v20  ;;  %v71_v35 = vshll.u32 %v416_v34, %v56_v20  ;;  %vm74_vm2 = vcmp.lt.s32.totalorder %v55_v19, 1  ;;  %vm75_vm3 = vcmp.lt.s32.totalorder %v55_v19, 2 }
  0x2b   :  { %v58_v37 = vshrl.u32 %v412_v26, %v57_v25  ;;  %v60_v38 = vshrl.u32 %v413_v28, %v57_v25  ;;  %v63_v39 = vshrl.u32 %v414_v30, %v57_v25  ;;  %v66_v40 = vshrl.u32 %v415_v32, %v57_v25 }
  0x2c   :  { %v69_v41 = vshrl.u32 %v416_v34, %v57_v25  ;;  %v72_v43 = vshrl.u32 %v417_v42, %v57_v25  ;;  %vm77_vm4 = vcmp.lt.s32.totalorder %v55_v19, 4  ;;  %v162_v47 = vsub.s32 32, %v161_v23 }
  0x2d   :  { %v61_v44 = vor.u32 %v60_v38, %v59_v27  ;;  %v64_v45 = vor.u32 %v63_v39, %v62_v29  ;;  %v67_v46 = vor.u32 %v66_v40, %v65_v31  ;;  %vm76_vm5 = vcmp.lt.s32.totalorder %v55_v19, 3 }
  0x2e   :  { %v70_v48 = vor.u32 %v69_v41, %v68_v33  ;;  %v73_v49 = vor.u32 %v72_v43, %v71_v35  ;;  %v164_v50 = vshll.u32 %v412_v26, %v161_v23  ;;  %v167_v58 = vshll.u32 %v413_v28, %v161_v23 }
  0x2f   :  { %v78_v51 = vsel %vm74_vm2, %v58_v37, %v61_v44  ;;  %v79_v52 = vsel %vm77_vm4, %v67_v46, 2102212464  ;;  %v82_v53 = vsel %vm74_vm2, %v61_v44, %v64_v45  ;;  %v86_v54 = vsel %vm74_vm2, %v64_v45, %v67_v46 }
  0x30   :  { %v80_v55 = vsel %vm76_vm5, %v64_v45, %v79_v52  ;;  %v83_v56 = vsel %vm77_vm4, %v70_v48, 920167782  ;;  %v87_v57 = vsel %vm77_vm4, %v73_v49, 1326507024  ;;  %v163_v61 = vshrl.u32 %v412_v26, %v162_v47 }
  0x31   :  { %v84_v59 = vsel %vm76_vm5, %v67_v46, %v83_v56  ;;  %v88_v60 = vsel %vm76_vm5, %v70_v48, %v87_v57  ;;  %v165_v62 = vshrl.u32 %v413_v28, %v162_v47  ;;  %v81_v63 = vsel %vm75_vm3, %v78_v51, %v80_v55 }
  0x32   :  { %v85_v5 = vsel %vm75_vm3, %v82_v53, %v84_v59  ;;  %v89_v7 = vsel %vm75_vm3, %v86_v54, %v88_v60  ;;  %v168_v8 = vshrl.u32 %v414_v30, %v162_v47  ;;  %v170_v15 = vshll.u32 %v414_v30, %v161_v23 }
  0x33   :  { %v477_v9 = vmul.u32.u64.low %v464_v22, %v89_v7  ;;  %v478_v10 = vmul.u32.u64.high %v464_v22, %v89_v7, %v477_v9  ;;  %v481_v11 = vmul.u32.u64.low %v464_v22, %v85_v5  ;;  %v482_v12 = vmul.u32.u64.high %v464_v22, %v85_v5, %v481_v11 }
  0x34   :  { %v166_v13 = vor.u32 %v165_v62, %v164_v50  ;;  %v169_v14 = vor.u32 %v168_v8, %v167_v58  ;;  %v171_v16 = vshrl.u32 %v415_v32, %v162_v47  ;;  %v173_v17 = vshll.u32 %v415_v32, %v161_v23 }
  0x35   :  { %v174_v18 = vshrl.u32 %v416_v34, %v162_v47  ;;  %v176_v20 = vshll.u32 %v416_v34, %v161_v23  ;;  %v177_v21 = vshrl.u32 %v417_v42, %v162_v47  ;;  %v97_v19 = vmul.u32 %v464_v22, %v81_v63 }
  0x36   :  { %v172_v25 = vor.u32 %v171_v16, %v170_v15  ;;  %vm179_vm6 = vcmp.lt.s32.totalorder %v468_v36, 1  ;;  %vm180_vm7 = vcmp.lt.s32.totalorder %v468_v36, 2  ;;  %vm99_vm8 = vc.u32 %v478_v10, %v481_v11 }
  0x37   :  { %v100_v26 = vadd.s32 1, %v482_v12  ;;  %v175_v27 = vor.u32 %v174_v18, %v173_v17  ;;  %vm181_vm9 = vcmp.lt.s32.totalorder %v468_v36, 3  ;;  %v178_v28 = vor.u32 %v177_v21, %v176_v20 }
  0x38   :  { %vm182_vm10 = vcmp.lt.s32.totalorder %v468_v36, 4  ;;  %v183_v29 = vsel %vm179_vm6, %v163_v61, %v166_v13  ;;  %v187_v23 = vsel %vm179_vm6, %v166_v13, %v169_v14  ;;  %v191_v32 = vsel %vm179_vm6, %v169_v14, %v172_v25 }
  0x39   :  { %v101_v30 = vsel %vm99_vm8, %v100_v26, %v482_v12  ;;  %v184_v22 = vsel %vm182_vm10, %v172_v25, 2102212464  ;;  %v188_v31 = vsel %vm182_vm10, %v175_v27, 920167782  ;;  %v192_v37 = vsel %vm182_vm10, %v178_v28, 1326507024 }
  0x3a   :  { %v102_v33 = vadd.s32 %v101_v30, %v97_v19  ;;  %v185_v34 = vsel %vm181_vm9, %v169_v14, %v184_v22  ;;  %v189_v35 = vsel %vm181_vm9, %v172_v25, %v188_v31  ;;  %v193_v40 = vsel %vm181_vm9, %v175_v27, %v192_v37 }
  0x3b   :  { %v186_v38 = vsel %vm180_vm7, %v183_v29, %v185_v34  ;;  %v190_v39 = vsel %vm180_vm7, %v187_v23, %v189_v35  ;;  %v194_v42 = vsel %vm180_vm7, %v191_v32, %v193_v40  ;;  %v98_v61 = vadd.s32 %v481_v11, %v478_v10 }
  0x3c   :  { %v103_v41 = vadd.s32 536870912, %v102_v33  ;;  %v499_v43 = vmul.u32.u64.low %v466_v24, %v190_v39  ;;  %v500_v44 = vmul.u32.u64.high %v466_v24, %v190_v39, %v499_v43  ;;  %v202_v48 = vmul.u32 %v466_v24, %v186_v38 }
  0x3d   :  { %v503_v45 = vmul.u32.u64.low %v466_v24, %v194_v42  ;;  %v504_v46 = vmul.u32.u64.high %v466_v24, %v194_v42, %v503_v45  ;;  %vm134_vm6 = vweird.f32 %v451_v2  ;;  %vm239_vm9 = vweird.f32 %v454_v3 }
  0x3e   :  { %v104_v47 = vshrl.u32 %v103_v41, 30  ;;  %v205_v50 = vadd.s32 1, %v500_v44 }
  0x3f   :  { %vm204_vm11 = vc.u32 %v504_v46, %v499_v43  ;;  %v203_v20 = vadd.s32 %v499_v43, %v504_v46 }
  0x40   :  { %v105_v49 = vshll.u32 %v104_v47, 30  ;;  %v206_v36 = vsel %vm204_vm11, %v205_v50, %v500_v44  ;;  %v128_v32 = vsub.s32 4, %v104_v47 }
  0x41   :  { %v207_v52 = vadd.s32 %v206_v36, %v202_v48 }
  0x42   :  { %v106_v51 = vsub.s32 %v102_v33, %v105_v49  ;;  %v129_v38 = vsel %vm44_vm14, %v128_v32, %v104_v47 }
  0x43   :  { %v208_v54 = vadd.s32 536870912, %v207_v52  ;;  %v131_v41 = vsel %vm515_vm15, 0, %v129_v38 }
  0x44   :  { %v108_v53 = vsub.s32 0, %v106_v51  ;;  %v135_v45 = vadd.s32 3, %v131_v41 }
  0x45   :  { %v209_v56 = vshrl.u32 %v208_v54, 30 }
  0x46   :  { %v289_v55 = vmin.u32 %v108_v53, %v106_v51  ;;  %v136_v48 = vand.u32 3, %v135_v45 }
  0x47   :  { %v210_v58 = vshll.u32 %v209_v56, 30  ;;  %v233_v4 = vsub.s32 4, %v209_v56 }
  0x48   :  { %v110_v57 = vclz %v289_v55  ;;  %vm138_vm2 = vcmp.eq.s32.totalorder %v136_v48, 0  ;;  %vm141_vm3 = vcmp.eq.s32.totalorder %v136_v48, 2  ;;  %vm137_vm4 = vcmp.lt.s32.totalorder %v136_v48, 2 }
  0x49   :  { %v211_v60 = vsub.s32 %v207_v52, %v210_v58  ;;  %v234_v43 = vsel %vm149_vm0, %v233_v4, %v209_v56 }
  0x4a   :  { %v290_v59 = vadd.s32 4294967294, %v110_v57  ;;  %v236_v46 = vsel %vm148_vm1, 0, %v234_v43 }
  0x4b   :  { %v213_v62 = vsub.s32 0, %v211_v60  ;;  %v240_v50 = vadd.s32 3, %v236_v46 }
  0x4c   :  { %vm291_vm12 = vcmp.lt.s32.totalorder %v290_v59, 0 }
  0x4d   :  { %v113_v24 = vsel %vm291_vm12, 0, %v290_v59  ;;  %v293_v8 = vmin.u32 %v213_v62, %v211_v60  ;;  %v241_v6 = vand.u32 3, %v240_v50 }
  0x4e   :  { %v114_v63 = vsub.s32 32, %v113_v24  ;;  %v115_v5 = vshll.u32 %v106_v51, %v113_v24  ;;  %v118_v7 = vsub.s32 4294967266, %v113_v24 }
  0x4f   :  { %v215_v13 = vclz %v293_v8  ;;  %vm246_vm5 = vcmp.eq.s32.totalorder %v241_v6, 2  ;;  %vm243_vm7 = vcmp.eq.s32.totalorder %v241_v6, 0  ;;  %vm242_vm8 = vcmp.lt.s32.totalorder %v241_v6, 2 }
  0x50   :  { %v116_v9 = vshrl.u32 %v98_v61, %v114_v63  ;;  %v119_v12 = vadd.s32 127, %v118_v7 }
  0x51   :  { %v294_v16 = vadd.s32 4294967294, %v215_v13 }
  0x52   :  { %v117_v14 = vor.u32 %v116_v9, %v115_v5  ;;  %v120_v15 = vshll.u32 %v119_v12, 23 }
  0x53   :  { %vm295_vm13 = vcmp.lt.s32.totalorder %v294_v16, 0 }
  0x54   :  { %v121_v17 = vor.u32 4788187, %v120_v15  ;;  %v124_v18 = vcvt.s32.f32 %v117_v14  ;;  %v218_v10 = vsel %vm295_vm13, 0, %v294_v16 }
  0x55   :  { %v219_v11 = vsub.s32 32, %v218_v10  ;;  %v220_v19 = vshll.u32 %v211_v60, %v218_v10  ;;  %v223_v25 = vsub.s32 4294967266, %v218_v10 }
  0x56   :  { %v122_v21 = vand.u32 2147483647, %v121_v17 }
  0x57   :  { %v221_v27 = vshrl.u32 %v203_v20, %v219_v11  ;;  %v224_v28 = vadd.s32 127, %v223_v25 }
  0x58   :  { %v125_v26 = vmul.f32 %v124_v18, %v122_v21 }
  0x59   :  { %v222_v30 = vor.u32 %v221_v27, %v220_v19  ;;  %v225_v22 = vshll.u32 %v224_v28, 23 }
  0x5a   :  { %v126_v23 = vxor.u32 2147483648, %v125_v26 }
  0x5b   :  { %v226_v34 = vor.u32 4788187, %v225_v22  ;;  %v229_v35 = vcvt.s32.f32 %v222_v30 }
  0x5c   :  { %v127_v31 = vsel %vm44_vm14, %v126_v23, %v125_v26 }
  0x5d   :  { %v130_v33 = vsel %vm515_vm15, %v451_v2, %v127_v31  ;;  %v227_v37 = vand.u32 2147483647, %v226_v34 }
  0x5e   :  { %314 = vcosq.f32 %v130_v33 }
  0x5f   :  { %316 = vsinq.f32 %v130_v33  ;;  %v230_v39 = vmul.f32 %v229_v35, %v227_v37 }
  0x61   :  { %v231_v40 = vxor.u32 2147483648, %v230_v39 }
  0x63   :  { %v232_v42 = vsel %vm149_vm0, %v231_v40, %v230_v39 }
  0x64   :  { %v235_v44 = vsel %vm148_vm1, %v454_v3, %v232_v42 }
  0x65   :  { %318 = vcosq.f32 %v235_v44 }
  0x66   :  { %320 = vsinq.f32 %v235_v44 }
  0x6b   :  { %v315_v47 = vpop.eup %314 }
  0x6c   :  { %v317_v49 = vpop.eup %316  ;;  %v142_v36 = vxor.u32 2147483648, %v315_v47 }
  0x6d   :  { %v139_v51 = vxor.u32 2147483648, %v317_v49 }
  0x6e   :  { %v143_v53 = vsel %vm141_vm3, %v142_v36, %v317_v49 }
  0x6f   :  { %v140_v52 = vsel %vm138_vm2, %v315_v47, %v139_v51 }
  0x70   :  { %v144_v56 = vsel %vm137_vm4, %v140_v52, %v143_v53 }
  0x71   :  { %v145_v60 = vsel %vm134_vm6, nan, %v144_v56 }
  0x72   :  { %v319_v54 = vpop.eup %318 }
  0x73   :  { %v321_v55 = vpop.eup %320  ;;  %v247_v57 = vxor.u32 2147483648, %v319_v54 }
  0x74   :  { %v244_v58 = vxor.u32 2147483648, %v321_v55 }
  0x75   :  { %v248_v59 = vsel %vm246_vm5, %v247_v57, %v321_v55 }
  0x76   :  { %v245_v61 = vsel %vm243_vm7, %v319_v54, %v244_v58 }
  0x77   :  { %v249_v24 = vsel %vm242_vm8, %v245_v61, %v248_v59 }
  0x78   :  { %v250_v62 = vsel %vm239_vm9, nan, %v249_v24 }
  0x79   :  { %v251_v63 = vmul.f32 %v250_v62, %v145_v60 }
  0x7b   :  { %v252_v5 = vmul.f32 0.08, %v251_v63  ;;  %v255_v7 = vmul.f32 -0.05, %v251_v63 }
  0x7d   :  { %v253_v2 = vadd.f32 %v252_v5, %v446_v0  ;;  %v256_v8 = vadd.f32 %v255_v7, %v448_v1 }
  0x7f   :  { %254 = vst [vmem:[#allocation7] sm:$0xff] %v253_v2  ;;  %257 = vst [vmem:[#allocation8] sm:$0xff] %v256_v8 }
  0x80   :  { %373 = shalt.err (!%p370_p0)
}
  0x81   :  { %267 = dma.vmem_to_hbm [thread:$0]  %s265_s1, 128, %s540_s2, [#allocation4]  }
  0x82   :  { %s382_s27 = scalar_lea.vmem %s275_s23, 128  ;;  %p387_p2 = scmp.lt.s32.totalorder %s275_s23, %s275_s23 }
  0x83   :  { %p383_p1 = scmp.ne.s32.totalorder %s275_s23, %s382_s27  ;;  %p388_p3 = scmp.lt.s32.totalorder %s382_s27, %s382_s27 }
  0x85   :  { %p389_p4 = por %p388_p3, %p387_p2 }
  0x87   :  { %p390_p5 = pnand %p389_p4, %p383_p1 }
  0x89   :  { %393 = shalt.err (!%p390_p5)
}
  0x8a   :  { %277 = dma.vmem_to_hbm [thread:$0]  %s275_s23, 128, %s541_s3, [#allocation9]  }
  0x8b   :  { %406 = dma.done.wait [#allocation4], 128  }
  0x8c   :  { %407 = vsyncadd [#allocation4], 4294967168 }
  0x8d   :  { %408 = dma.done.wait [#allocation9], 128  }
  0x8e   :  { %409 = vsyncadd [#allocation9], 4294967168 }
  0x8f   :  { %284 = vsyncpa [#allocation3], 1 }
  0x90   :  { %285 = vsyncpa [#allocation6], 1 }
  0x91   :  { %286 = vsyncpa [#allocation4], 1 }
  0x92   :  { %287 = vsyncpa [#allocation9], 1 }

</bundles_post_ra>
